<compile_context>
chip_gen: v7x
topology: tpu7x:2x2x1
jax: 0.10.0
libtpu: 0.0.40
codegen_flags: <defaults>
</compile_context>

<pallas_src>
import functools
import math

import jax
import jax.numpy as jnp
from jax.experimental import pallas as pl
from jax.experimental.pallas import tpu as pltpu

_MiB = 1024 * 1024


@functools.lru_cache(maxsize=None)
def _vmem_physical_bytes():
    """Physical VMEM per TensorCore (128 MiB v5e/v6e, 64 MiB v7x)."""
    try:
        info = pltpu.get_tpu_info()
        for attr in ("vmem_capacity_bytes", "vmem_bytes", "vmem_size_bytes"):
            v = getattr(info, attr, None)
            if v:
                return int(v)
    except Exception:
        pass
    return 64 * _MiB  # conservative fallback (v7x-sized)


def _pick_tile(extent, multiple, cap):
    """Largest divisor of `extent` that is a multiple of `multiple` and <= cap.

    Falls back to the full extent (always a legal block shape) when no aligned
    divisor <= cap exists."""
    if extent <= cap:
        return extent
    t = (cap // multiple) * multiple
    while t >= multiple:
        if extent % t == 0:
            return t
        t -= multiple
    return extent


def _compiler_params(semantics, in_block_bytes, out_block_bytes, scratch_bytes):
    phys = _vmem_physical_bytes()
    # 2x input (double-buffered) + 2x output + scratch + slack.
    needed = 2 * in_block_bytes + 2 * out_block_bytes + scratch_bytes + 2 * _MiB
    limit = int(min(max(phys - 8 * _MiB, 16 * _MiB), max(needed, phys // 2)))
    return pltpu.CompilerParams(dimension_semantics=semantics,
                                vmem_limit_bytes=limit)


# ---------------------------------------------------------------------------
# Kernels.
# ---------------------------------------------------------------------------
def _sum_single(x_ref, o_ref, *, axis, keepdims, acc_dtype):
    # Whole reduction axis in one block: no scratch, no phases.
    o_ref[...] = jnp.sum(x_ref[...].astype(acc_dtype), axis=axis,
                         keepdims=keepdims).astype(o_ref.dtype)


def _sum_multi_inplace(x_ref, o_ref, *, axis, keepdims, red_grid_axis):
    # Accumulate directly into the resident output block (out dtype == acc dtype).
    r = pl.program_id(red_grid_axis)

    @pl.when(r == 0)
    def _():
        o_ref[...] = jnp.zeros_like(o_ref)

    o_ref[...] += jnp.sum(x_ref[...], axis=axis, keepdims=keepdims)


def _sum_multi_scratch(x_ref, o_ref, acc_ref, *, axis, keepdims, red_grid_axis):
    # Wide accumulator in VMEM scratch (bf16 / narrow-int inputs).
    r = pl.program_id(red_grid_axis)

    @pl.when(r == 0)
    def _():
        acc_ref[...] = jnp.zeros_like(acc_ref)

    acc_ref[...] += jnp.sum(x_ref[...].astype(acc_ref.dtype), axis=axis,
                            keepdims=keepdims)

    @pl.when(r == pl.num_programs(red_grid_axis) - 1)
    def _():
        o_ref[...] = acc_ref[...].astype(o_ref.dtype)


# ---------------------------------------------------------------------------
# Wrapper: AverageTokens.forward(x) == x.sum(dim)
# ---------------------------------------------------------------------------
@functools.partial(jax.jit, static_argnames=("dim", "block_budget_bytes"))
def average_tokens(x, dim, block_budget_bytes=None):
    shape = x.shape
    dim = dim % x.ndim
    pre = math.prod(shape[:dim])
    red = shape[dim]
    post = math.prod(shape[dim + 1:])
    out_final_shape = shape[:dim] + shape[dim + 1:]

    itemsize = jnp.dtype(x.dtype).itemsize
    sublane_mult = {4: 8, 2: 16, 1: 32}.get(itemsize, 8)
    is_float = jnp.issubdtype(x.dtype, jnp.floating)
    acc_dtype = jnp.float32 if is_float else jnp.int32
    # TODO(synk): torch promotes integer sums to int64; we keep x.dtype (the
    # iTransformer decoder only ever reduces float activations).
    inplace_ok = jnp.dtype(x.dtype) == jnp.dtype(acc_dtype)

    phys = _vmem_physical_bytes()
    in_budget = int(block_budget_bytes) if block_budget_bytes is not None \
        else max(2 * _MiB, phys // 8)
    out_budget = max(512 * 1024, phys // 32)
    total_bytes = pre * red * post * itemsize

    if post == 1:
        # ---- reduce trailing axis: 2-D layout, reduced axis on lanes -------
        x2 = x.reshape(pre, red)
        red_cap = max(128, in_budget // (sublane_mult * itemsize))
        red_tile = _pick_tile(red, 128, red_cap)
        rows = max(1, in_budget // (red_tile * itemsize))
        pre_tile = pre if pre <= rows else _pick_tile(
            pre, sublane_mult, max(sublane_mult, rows))
        # Megacore / v7x: expose >=2 parallel blocks on big inputs.
        if (pre // pre_tile == 1 and total_bytes > 4 * _MiB
                and pre_tile % (2 * sublane_mult) == 0):
            pre_tile //= 2

        pre_blocks = pre // pre_tile
        red_blocks = red // red_tile
        assert pre_blocks * pre_tile == pre and red_blocks * red_tile == red

        in_block_bytes = pre_tile * red_tile * itemsize
        out_block_bytes = pre_tile * itemsize
        use_scratch = red_blocks > 1 and not inplace_ok
        scratch_bytes = pre_tile * 4 if use_scratch else 0
        out_shape = jax.ShapeDtypeStruct((pre, 1), x.dtype)

        if red_blocks == 1:
            out2 = pl.pallas_call(
                functools.partial(_sum_single, axis=-1, keepdims=True,
                                  acc_dtype=acc_dtype),
                out_shape=out_shape,
                grid_spec=pltpu.PrefetchScalarGridSpec(
                    num_scalar_prefetch=0,
                    grid=(pre_blocks,),
                    in_specs=[pl.BlockSpec((pre_tile, red), lambda i: (i, 0))],
                    out_specs=pl.BlockSpec((pre_tile, 1), lambda i: (i, 0)),
                ),
                compiler_params=_compiler_params(
                    ("parallel",), in_block_bytes, out_block_bytes, 0),
            )(x2)
        else:
            if inplace_ok:
                kernel = functools.partial(_sum_multi_inplace, axis=-1,
                                           keepdims=True, red_grid_axis=1)
                scratch_shapes = []
            else:
                kernel = functools.partial(_sum_multi_scratch, axis=-1,
                                           keepdims=True, red_grid_axis=1)
                scratch_shapes = [pltpu.VMEM((pre_tile, 1), acc_dtype)]
            out2 = pl.pallas_call(
                kernel,
                out_shape=out_shape,
                grid_spec=pltpu.PrefetchScalarGridSpec(
                    num_scalar_prefetch=0,
                    grid=(pre_blocks, red_blocks),
                    in_specs=[pl.BlockSpec((pre_tile, red_tile),
                                           lambda i, r: (i, r))],
                    out_specs=pl.BlockSpec((pre_tile, 1), lambda i, r: (i, 0)),
                    scratch_shapes=scratch_shapes,
                ),
                compiler_params=_compiler_params(
                    ("parallel", "arbitrary"), in_block_bytes,
                    out_block_bytes, scratch_bytes),
            )(x2)
        return out2.reshape(out_final_shape)

    # ---- general case: (pre, red, post), reduce the middle axis ------------
    x3 = x.reshape(pre, red, post)

    # 1) lane axis first: full-width, HBM-contiguous rows.
    post_cap = max(128, in_budget // (sublane_mult * sublane_mult * itemsize))
    post_tile = _pick_tile(post, 128, post_cap)

    # 2) leading pre axis (cheapest to cut): small enough that at least one
    #    sublane-aligned reduction chunk fits and the output block stays modest.
    pre_cap = max(1, in_budget // (sublane_mult * post_tile * itemsize))
    pre_cap = min(pre_cap, max(1, out_budget // (post_tile * itemsize)))
    pre_tile = pre if pre <= pre_cap else _pick_tile(
        pre, sublane_mult, max(sublane_mult, pre_cap))

    # Megacore / v7x: make sure both TensorCores get parallel blocks when the
    # input is big enough to matter.
    if pre // pre_tile == 1 and post // post_tile == 1 and total_bytes > 4 * _MiB:
        if post_tile % 256 == 0:
            post_tile //= 2
        elif pre_tile % (2 * sublane_mult) == 0:
            pre_tile //= 2

    # 3) reduction axis gets the remaining budget: few, fat chunks.
    red_cap = max(1, in_budget // (pre_tile * post_tile * itemsize))
    red_tile = red if red <= red_cap else _pick_tile(
        red, sublane_mult, max(sublane_mult, red_cap))

    pre_blocks = pre // pre_tile
    post_blocks = post // post_tile
    red_blocks = red // red_tile
    assert pre_blocks * pre_tile == pre
    assert post_blocks * post_tile == post
    assert red_blocks * red_tile == red

    in_block_bytes = pre_tile * red_tile * post_tile * itemsize
    out_block_bytes = pre_tile * post_tile * itemsize
    use_scratch = red_blocks > 1 and not inplace_ok
    scratch_bytes = pre_tile * post_tile * 4 if use_scratch else 0
    out_shape = jax.ShapeDtypeStruct((pre, post), x.dtype)

    if red_blocks == 1:
        out2 = pl.pallas_call(
            functools.partial(_sum_single, axis=1, keepdims=False,
                              acc_dtype=acc_dtype),
            out_shape=out_shape,
            grid_spec=pltpu.PrefetchScalarGridSpec(
                num_scalar_prefetch=0,
                grid=(pre_blocks, post_blocks),
                in_specs=[pl.BlockSpec((pre_tile, red, post_tile),
                                       lambda i, j: (i, 0, j))],
                out_specs=pl.BlockSpec((pre_tile, post_tile),
                                       lambda i, j: (i, j)),
            ),
            compiler_params=_compiler_params(
                ("parallel", "parallel"), in_block_bytes, out_block_bytes, 0),
        )(x3)
    else:
        if inplace_ok:
            kernel = functools.partial(_sum_multi_inplace, axis=1,
                                       keepdims=False, red_grid_axis=2)
            scratch_shapes = []
        else:
            kernel = functools.partial(_sum_multi_scratch, axis=1,
                                       keepdims=False, red_grid_axis=2)
            scratch_shapes = [pltpu.VMEM((pre_tile, post_tile), acc_dtype)]
        out2 = pl.pallas_call(
            kernel,
            out_shape=out_shape,
            grid_spec=pltpu.PrefetchScalarGridSpec(
                num_scalar_prefetch=0,
                grid=(pre_blocks, post_blocks, red_blocks),
                in_specs=[pl.BlockSpec((pre_tile, red_tile, post_tile),
                                       lambda i, j, r: (i, r, j))],
                out_specs=pl.BlockSpec((pre_tile, post_tile),
                                       lambda i, j, r: (i, j)),
                scratch_shapes=scratch_shapes,
            ),
            compiler_params=_compiler_params(
                ("parallel", "parallel", "arbitrary"), in_block_bytes,
                out_block_bytes, scratch_bytes),
        )(x3)

    return out2.reshape(out_final_shape)


if __name__ == "__main__":
    key = jax.random.PRNGKey(0)
    k1, k2, k3, k4, k5 = jax.random.split(key, 5)

    # 1) Decoder use-case: AverageTokens(dim=1) over encoder output (B, T, H).
    x1 = jax.random.normal(k1, (2, 16, 32), dtype=jnp.float32)
    out1 = jax.block_until_ready(average_tokens(x1, dim=1))
    ref1 = jnp.sum(x1, axis=1)
    assert out1.shape == ref1.shape, (out1.shape, ref1.shape)
    assert jnp.allclose(out1, ref1, atol=1e-5, rtol=1e-5), "mismatch (dim=1, small)"

    # 2) Lane-dense shape — single-step fast path.
    x2 = jax.random.normal(k2, (8, 128, 256), dtype=jnp.float32)
    out2 = jax.block_until_ready(average_tokens(x2, dim=1))
    ref2 = jnp.sum(x2, axis=1)
    assert jnp.allclose(out2, ref2, atol=1e-4, rtol=1e-4), "mismatch (dim=1, large)"

    # 3) Reducing the trailing axis (post == 1): lane-oriented 2-D path.
    x3 = jax.random.normal(k3, (2, 8, 16), dtype=jnp.float32)
    out3 = jax.block_until_ready(average_tokens(x3, dim=2))
    ref3 = jnp.sum(x3, axis=2)
    assert out3.shape == ref3.shape, (out3.shape, ref3.shape)
    assert jnp.allclose(out3, ref3, atol=1e-5, rtol=1e-5), "mismatch (dim=2)"

    # 4) Multi-step reduction, f32 -> in-place accumulation in the output block.
    out4 = jax.block_until_ready(
        average_tokens(x2, dim=1, block_budget_bytes=64 * 1024))
    assert jnp.allclose(out4, ref2, atol=1e-3, rtol=1e-4), "mismatch (multi, f32)"

    # 5) Multi-step reduction, bf16 -> f32 VMEM scratch accumulator.
    x5 = jax.random.normal(k4, (8, 128, 256), dtype=jnp.float32).astype(jnp.bfloat16)
    out5 = jax.block_until_ready(
        average_tokens(x5, dim=1, block_budget_bytes=64 * 1024))
    ref5 = jnp.sum(x5.astype(jnp.float32), axis=1)
    assert jnp.allclose(out5.astype(jnp.float32), ref5, atol=0.5, rtol=2e-2), \
        "mismatch (multi, bf16)"

    # 6) Multi-step trailing-axis reduction (post == 1 path, tiled).
    x6 = jax.random.normal(k5, (16, 512), dtype=jnp.float32)
    out6 = jax.block_until_ready(
        average_tokens(x6, dim=1, block_budget_bytes=8 * 1024))
    ref6 = jnp.sum(x6, axis=1)
    assert out6.shape == ref6.shape, (out6.shape, ref6.shape)
    assert jnp.allclose(out6, ref6, atol=1e-3, rtol=1e-4), "mismatch (multi, post==1)"

    # 7) Reducing the leading axis (dim=0).
    x7 = jax.random.normal(k1, (16, 2, 32), dtype=jnp.float32)
    out7 = jax.block_until_ready(average_tokens(x7, dim=0))
    ref7 = jnp.sum(x7, axis=0)
    assert jnp.allclose(out7, ref7, atol=1e-4, rtol=1e-4), "mismatch (dim=0)"

    print("KERNEL_OK")
</pallas_src>

<mosaic_0001>
module attributes {stable_mosaic.version = 11 : i64} {
  func.func @_sum_single(%arg0: i32, %arg1: i32, %arg2: memref<2x16x32xf32, #tpu.memory_space<vmem>>, %arg3: memref<2x32xf32, #tpu.memory_space<vmem>>) attributes {dimension_semantics = [#tpu.dimension_semantics<parallel>, #tpu.dimension_semantics<parallel>], iteration_bounds = array<i64: 1, 1>, scalar_prefetch = 0 : i64, scratch_operands = 0 : i64, tpu.core_type = #tpu.core_type<tc>, window_params = [{transform_indices = @transform_0, window_bounds = array<i64: 2, 16, 32>}, {transform_indices = @transform_1, window_bounds = array<i64: 2, 32>}]} {
    %c0 = arith.constant 0 : index
    %c0_0 = arith.constant 0 : index
    %c0_1 = arith.constant 0 : index
    %0 = vector.load %arg2[%c0, %c0_0, %c0_1] : memref<2x16x32xf32, #tpu.memory_space<vmem>>, vector<2x16x32xf32>
    %cst = arith.constant dense<0.000000e+00> : vector<2x32xf32>
    %1 = vector.multi_reduction <add>, %0, %cst [1] : vector<2x16x32xf32> to vector<2x32xf32>
    %c0_2 = arith.constant 0 : index
    %c0_3 = arith.constant 0 : index
    %2 = vector.load %arg3[%c0_2, %c0_3] : memref<2x32xf32, #tpu.memory_space<vmem>>, vector<2x32xf32>
    tpu.vector_store %arg3[%c0_2, %c0_3], %1 {strides = array<i32>} : memref<2x32xf32, #tpu.memory_space<vmem>>, vector<2x32xf32>,
    return
  }
  func.func @transform_0(%arg0: i32, %arg1: i32) -> (i32, i32, i32) {
    %c0_i32 = arith.constant 0 : i32
    %c0_i32_0 = arith.constant 0 : i32
    return %arg0, %c0_i32, %arg1 : i32, i32, i32
  }
  func.func @transform_1(%arg0: i32, %arg1: i32) -> (i32, i32) {
    %c0_i32 = arith.constant 0 : i32
    return %arg0, %arg1 : i32, i32
  }
}

</mosaic_0001>

<bundles_post_ra>
// kernel: average_tokens.1
= control target key start
LH: loop header
LB: loop body
LE: loop exit
PB: predicated region body
PF: predicated region fallthrough
CT: control target
= control target key end

     0   :  { %6 = vsyncpa [#allocation3], 0  ;;  %s158_s0 = inlined_call_operand.hbm [shape: f32[2,16,32], index: 0, kind: input, shape index: {}]   ;;  %s159_s1 = inlined_call_operand.hbm [shape: f32[2,32], index: 1, kind: output, shape index: {}]  }
   0x1   :  { %7 = vsyncpa [#allocation4], 0  ;;  %s120_s6 = smov [#allocation2]   ;;  %s72_s10 = scalar_lea.hbm %s158_s0, 512 }
   0x2   :  { %s13_s7 = sshll.u32 %s120_s6, 4  ;;  %p73_p0 = scmp.ne.s32.totalorder %s158_s0, %s72_s10  ;;  %s14_s7 = int_to_ptr.vmem [resolvable:$true] %s13_s7 }
   0x3   :  { %p76_p1 = scmp.lt.u32.totalorder %s72_s10, %s158_s0 }
   0x5   :  { %p78_p2 = pnand %p76_p1, %p73_p0 }
   0x7   :  { %81 = shalt.err (!%p78_p2)
}
   0x8   :  { %s82_s15 = scalar_lea.vmem %s14_s7, 512  ;;  %p87_p4 = scmp.lt.s32.totalorder %s14_s7, %s14_s7 }
   0x9   :  { %p83_p3 = scmp.ne.s32.totalorder %s14_s7, %s82_s15  ;;  %p88_p5 = scmp.lt.s32.totalorder %s82_s15, %s82_s15 }
   0xb   :  { %p89_p6 = por %p88_p5, %p87_p4 }
   0xd   :  { %p90_p7 = pnand %p89_p6, %p83_p3 }
   0xf   :  { %93 = shalt.err (!%p90_p7)
}
  0x10   :  { %s121_s16 = smov 128   ;;  %s122_s17 = smov 8  }
  0x11   :  { %19 = dma.hbm_to_vmem [thread:$0]  %s158_s0, 512, %s14_s7, [#allocation3], %s121_s16, %s121_s16, %s122_s17  }
  0x12   :  { %116 = dma.done.wait [#allocation3], 512  }
  0x13   :  { %117 = vsyncadd [#allocation3], 4294966784  ;;  %vm27_vm0 = vcmask 261120   ;;  %v23_v0 = vld [vmem:[#allocation2] sm:$0xff]  ;;  %v24_v1 = vld [vmem:[#allocation2 + $0x8] sm:$0xff]  ;;  %s123_s0 = smov [#allocation5]  }
  0x14   :  { %v25_v2 = vld [vmem:[#allocation2 + $0x10] sm:$0xff]  ;;  %v26_v3 = vld [vmem:[#allocation2 + $0x18] sm:$0xff]  ;;  %v28_v4 = vsel %vm27_vm0, %v23_v0, 0.0  ;;  %v29_v5 = vsel %vm27_vm0, %v24_v1, 0.0  ;;  %s59_s20 = sshll.u32 %s123_s0, 4  ;;  %vm48_vm1 = vcmask 1041409   ;;  %s60_s20 = int_to_ptr.vmem [resolvable:$true] %s59_s20 }
  0x15   :  { %v37_v6 = vsel %vm27_vm0, %v25_v2, 0.0  ;;  %v30_v7 = vadd.f32 %v29_v5, %v28_v4  ;;  %v38_v8 = vsel %vm27_vm0, %v26_v3, 0.0  ;;  %vm51_vm2 = vcmask 254976   ;;  %s94_s21 = scalar_lea.vmem %s60_s20, 32  ;;  %p99_p9 = scmp.lt.s32.totalorder %s60_s20, %s60_s20 }
  0x16   :  { %v39_v9 = vadd.f32 %v38_v8, %v37_v6  ;;  %p95_p8 = scmp.ne.s32.totalorder %s60_s20, %s94_s21  ;;  %p100_p10 = scmp.lt.s32.totalorder %s94_s21, %s94_s21 }
  0x17   :  { %v31_v10 = vrot.slane %v30_v7, 4 }
  0x18   :  { %v40_v11 = vrot.slane %v39_v9, 4  ;;  %p101_p11 = por %p100_p10, %p99_p9 }
  0x19   :  { %v32_v12 = vadd.f32 %v31_v10, %v30_v7 }
  0x1a   :  { %v41_v13 = vadd.f32 %v40_v11, %v39_v9  ;;  %p102_p12 = pnand %p101_p11, %p95_p8 }
  0x1b   :  { %v33_v14 = vrot.slane %v32_v12, 2 }
  0x1c   :  { %v42_v15 = vrot.slane %v41_v13, 2 }
  0x1d   :  { %v34_v16 = vadd.f32 %v33_v14, %v32_v12 }
  0x1e   :  { %v43_v17 = vadd.f32 %v42_v15, %v41_v13 }
  0x1f   :  { %v35_v18 = vrot.slane %v34_v16, 1 }
  0x20   :  { %v44_v19 = vrot.slane %v43_v17, 1 }
  0x21   :  { %v36_v20 = vadd.f32 %v35_v18, %v34_v16 }
  0x22   :  { %v45_v21 = vadd.f32 %v44_v19, %v43_v17 }
  0x24   :  { %v49_v22 = vsel %vm48_vm1, %v45_v21, %v36_v20 }
  0x25   :  { %52 = vst.msk [vmem:[#allocation5] sm:$0x3] %vm51_vm2, %v49_v22 }
  0x26   :  { %105 = shalt.err (!%p102_p12)
}
  0x27   :  { %s106_s24 = scalar_lea.hbm %s159_s1, 32 }
  0x28   :  { %p107_p13 = scmp.ne.s32.totalorder %s159_s1, %s106_s24  ;;  %p110_p0 = scmp.lt.u32.totalorder %s106_s24, %s159_s1 }
  0x2a   :  { %p112_p1 = pnand %p110_p0, %p107_p13 }
  0x2c   :  { %115 = shalt.err (!%p112_p1)
}
  0x2d   :  { %62 = dma.vmem_to_hbm [thread:$0]  %s60_s20, 32, %s159_s1, [#allocation4]  }
  0x2e   :  { %118 = dma.done.wait [#allocation4], 32  }
  0x2f   :  { %119 = vsyncadd [#allocation4], 4294967264 }
  0x30   :  { %66 = vsyncpa [#allocation3], 1 }
  0x31   :  { %67 = vsyncpa [#allocation4], 1 }

</bundles_post_ra>
